<compile_context>
chip_gen: v6e
topology: v6e:2x2x1
jax: 0.10.0
libtpu: 0.0.40
codegen_flags: <defaults>
</compile_context>

<pallas_src>
import functools

import numpy as np
import jax
import jax.numpy as jnp
from jax.experimental import pallas as pl
from jax.experimental.pallas import tpu as pltpu

# Per-edge log-prob biases are clamped below so exp(score + bias - clamp) stays a normal
# float (and -inf biases cannot produce NaN).  Only changes results for probabilities
# below exp(-60) ~ 1e-26.
_BIAS_MIN = -60.0
_VMEM_CAP = 60 * 1024 * 1024    # stay below v7x's 64 MiB physical VMEM

_NN = (((1,), (0,)), ((), ()))   # plain matmul:           A[m,k] . B[k,n]
_TN = (((0,), (0,)), ((), ()))   # contract lhs axis 0:    A[k,m]^T . B[k,n]


def _round_up(x, m):
    return ((x + m - 1) // m) * m


# ----------------------------------------------------------------------------------
# Kernel 1: fused dense projection  out = x @ W_cat + b_cat   (5 projections, 1 launch)
# Row-tiled ("parallel") grid, bf16 operands / bf16 output (downstream is bf16 anyway).
# ----------------------------------------------------------------------------------
def _linear_kernel(x_ref, w_ref, b_ref, o_ref):
    o_ref[...] = (
        jnp.dot(x_ref[...], w_ref[...], preferred_element_type=jnp.float32)
        + b_ref[...]
    ).astype(o_ref.dtype)


def fused_linear(x, w, b, *, tm=512):
    m, kdim = x.shape
    f = w.shape[1]
    x = x.astype(jnp.bfloat16)
    w = w.astype(jnp.bfloat16)
    b = b.reshape(1, f).astype(jnp.float32)

    tm_eff = min(int(tm), _round_up(m, 8))
    m_pad = _round_up(m, tm_eff)
    if m_pad != m:
        x = jnp.pad(x, ((0, m_pad - m), (0, 0)))

    out = pl.pallas_call(
        _linear_kernel,
        out_shape=jax.ShapeDtypeStruct((m_pad, f), jnp.bfloat16),
        grid_spec=pltpu.PrefetchScalarGridSpec(
            num_scalar_prefetch=0,
            grid=(m_pad // tm_eff,),
            in_specs=[
                pl.BlockSpec((tm_eff, kdim), lambda i: (i, 0)),
                pl.BlockSpec((kdim, f), lambda i: (0, 0)),
                pl.BlockSpec((1, f), lambda i: (0, 0)),
            ],
            out_specs=pl.BlockSpec((tm_eff, f), lambda i: (i, 0)),
        ),
        compiler_params=pltpu.CompilerParams(
            dimension_semantics=("parallel",)),
    )(x, w, b)
    return out[:m] if m_pad != m else out


# ----------------------------------------------------------------------------------
# Kernel 2: one attention branch (real or fake edges), edge-tiled grid.
#   per tile:  build one-hots from int32 index tiles, gather K/V and Q with bf16
#              matmuls, project edge attrs, score -> clamp -> exp(score+bias-clamp),
#              fused 2*HD-wide scatter-add of [exp | exp*V] into a resident accumulator.
#   finalize:  wv = acc_msg * (scale / acc_lsum)    (scale = 1/(g+1) or g/(g+1))
# ----------------------------------------------------------------------------------
def _attn_branch_kernel(
    kv_ref,      # [N, 2*HD] bf16   columns = [K|V] (real) or [V|Kf] (fake)  (resident)
    q_ref,       # [N, HD]   bf16                                            (resident)
    ea_ref,      # [TE, DE]  bf16   edge attributes (or zeros)               (tiled)
    we_ref,      # [DE, HD]  bf16   edge-attr projection weight              (resident)
    be_ref,      # [1, HD]   f32    edge-attr projection bias                (resident)
    src_ref,     # [TE, 1]   i32    source node index per edge               (tiled)
    dst_ref,     # [TE, 1]   i32    destination node index per edge          (tiled)
    bias_ref,    # [TE, 1]   f32    per-edge log-prob bias                   (tiled)
    bd2_ref,     # [HD, 2*HD] bf16  replicated block-diag head pool+bcast    (resident)
    wv_ref,      # [N, HD]   f32    output (resident across the edge grid)
    acc_ref,     # [N, 2*HD] f32    scratch: [lsum | sum(exp*V)] (order depends v_first)
    *, inv_d_sqrt, clamp, hd, scale, v_first,
):
    t = pl.program_id(0)

    @pl.when(t == 0)
    def _init():
        acc_ref[...] = jnp.zeros_like(acc_ref)

    dotf32 = functools.partial(
        jax.lax.dot_general, preferred_element_type=jnp.float32)

    n = kv_ref.shape[0]
    te = src_ref.shape[0]

    # One-hot gather/scatter matrices built in-kernel (VPU iota+compare), never in HBM.
    one = jnp.ones((), jnp.bfloat16)
    zero = jnp.zeros((), jnp.bfloat16)
    col = jax.lax.broadcasted_iota(jnp.int32, (te, n), 1)
    src_oh = jnp.where(col == src_ref[...], one, zero)           # [TE, N] bf16
    dst_oh = jnp.where(col == dst_ref[...], one, zero)           # [TE, N] bf16

    # Batched gathers (bf16 MXU, f32 accumulate).
    kv_src = dotf32(src_oh, kv_ref[...], _NN)                    # [TE, 2*HD]
    q_dst = dotf32(dst_oh, q_ref[...], _NN)                      # [TE, HD]

    # Edge-attribute projection fused into the kernel.
    e_att = dotf32(ea_ref[...], we_ref[...], _NN) + be_ref[...]  # [TE, HD]

    k_src = kv_src[:, hd:] if v_first else kv_src[:, :hd]        # [TE, HD]
    s_el = (k_src * q_dst * e_att).astype(jnp.bfloat16)          # [TE, HD]

    # One bf16 matmul both pools the per-head score (sum over D) and broadcasts it to
    # both output halves (2*HD lanes).
    score2 = dotf32(s_el, bd2_ref[...], _NN) * inv_d_sqrt        # [TE, 2*HD]
    score2 = jnp.clip(score2, -clamp, clamp)

    # Segment softmax without a segment-max pass: |score| <= clamp and bias >= _BIAS_MIN,
    # so exp(score + bias - clamp) lies in (exp(_BIAS_MIN - 2*clamp), exp(bias_max)].
    ex2 = jnp.exp(score2 + bias_ref[...] - clamp)                # [TE, 2*HD]

    # Fused scatter payload: V-half gets exp*V (message), other half gets exp (denom).
    lane = jax.lax.broadcasted_iota(jnp.int32, (te, 2 * hd), 1)
    is_v = (lane < hd) if v_first else (lane >= hd)
    upd = (ex2 * jnp.where(is_v, kv_src, 1.0)).astype(jnp.bfloat16)   # [TE, 2*HD]

    # Single 2*HD-wide scatter-add over destination nodes (un-transposed one-hot).
    acc_ref[...] += dotf32(dst_oh, upd, _TN)                     # [N, 2*HD]

    @pl.when(t == pl.num_programs(0) - 1)
    def _finalize():
        if v_first:
            num = acc_ref[:, :hd]
            lsum = acc_ref[:, hd:]
        else:
            lsum = acc_ref[:, :hd]
            num = acc_ref[:, hd:]
        denom = jnp.where(lsum > 0.0, lsum, 1.0)     # isolated nodes -> 0 output
        wv_ref[...] = num * (pl.reciprocal(denom, approx=True) * scale)


def _attention_branch(kv, q, edge_attr, we, be, src, dst, bias, bd2,
                      *, hd, inv_d_sqrt, clamp, scale, v_first, edge_tile):
    n = q.shape[0]
    e = int(src.shape[0])
    if e == 0:
        return jnp.zeros((n, hd), jnp.float32)
    de = edge_attr.shape[1]

    # Edge-tile size: multiple of 16 (bf16 sublane packing); also capped so the two
    # in-kernel [TE, N] bf16 one-hot temporaries stay a few MiB (VMEM budget, v7x-safe).
    te_cap = max(16, (4 * 1024 * 1024) // max(2 * n, 1))
    te = _round_up(min(int(edge_tile), e, te_cap), 16)
    e_pad = _round_up(e, te)
    pad = e_pad - e

    src_col = src.astype(jnp.int32).reshape(-1, 1)
    dst_col = dst.astype(jnp.int32).reshape(-1, 1)
    if pad:
        # Padding edges use an out-of-range index -> all-zero one-hot row in-kernel,
        # so they contribute nothing to the gathers or scatters.
        src_col = jnp.pad(src_col, ((0, pad), (0, 0)), constant_values=n)
        dst_col = jnp.pad(dst_col, ((0, pad), (0, 0)), constant_values=n)
        edge_attr = jnp.pad(edge_attr, ((0, pad), (0, 0)))
        bias = jnp.pad(bias, ((0, pad), (0, 0)), constant_values=_BIAS_MIN)

    # VMEM budget estimate (resident blocks + double-buffered tiles + value temps);
    # raise the scoped limit accordingly but never above v7x's physical capacity.
    bf16_b, f32_b = 2, 4
    resident = (n * 2 * hd + n * hd) * bf16_b * 2                 # kv + q (2 buffers)
    resident += (de * hd + hd * 2 * hd) * bf16_b * 2 + hd * f32_b * 2
    resident += n * hd * f32_b * 2                                # output block
    resident += n * 2 * hd * f32_b                                # accumulator scratch
    per_tile = (te * de * bf16_b + 3 * te * f32_b) * 2            # ea / src / dst / bias
    temps = 2 * te * n * bf16_b + 10 * te * hd * f32_b            # one-hots + values
    vmem_limit = int(min(max(2 * (resident + per_tile + temps),
                             32 * 1024 * 1024), _VMEM_CAP))

    kernel = functools.partial(
        _attn_branch_kernel,
        inv_d_sqrt=float(inv_d_sqrt), clamp=float(clamp),
        hd=hd, scale=float(scale), v_first=bool(v_first))

    return pl.pallas_call(
        kernel,
        out_shape=jax.ShapeDtypeStruct((n, hd), jnp.float32),
        grid_spec=pltpu.PrefetchScalarGridSpec(
            num_scalar_prefetch=0,
            grid=(e_pad // te,),
            in_specs=[
                pl.BlockSpec((n, 2 * hd), lambda t: (0, 0)),      # kv        (resident)
                pl.BlockSpec((n, hd), lambda t: (0, 0)),          # q         (resident)
                pl.BlockSpec((te, de), lambda t: (t, 0)),         # edge attr (tiled)
                pl.BlockSpec((de, hd), lambda t: (0, 0)),         # We        (resident)
                pl.BlockSpec((1, hd), lambda t: (0, 0)),          # be        (resident)
                pl.BlockSpec((te, 1), lambda t: (t, 0)),          # src idx   (tiled)
                pl.BlockSpec((te, 1), lambda t: (t, 0)),          # dst idx   (tiled)
                pl.BlockSpec((te, 1), lambda t: (t, 0)),          # bias      (tiled)
                pl.BlockSpec((hd, 2 * hd), lambda t: (0, 0)),     # bd2       (resident)
            ],
            out_specs=pl.BlockSpec((n, hd), lambda t: (0, 0)),
            scratch_shapes=[
                pltpu.VMEM((n, 2 * hd), jnp.float32),             # [lsum | acc]
            ],
        ),
        compiler_params=pltpu.CompilerParams(
            dimension_semantics=("arbitrary",),
            vmem_limit_bytes=vmem_limit),
    )(kv, q, edge_attr, we, be, src_col, dst_col, bias, bd2)


# ----------------------------------------------------------------------------------
# Wrapper (parameter packing / glue in plain JAX, hot path in the Pallas kernels)
# ----------------------------------------------------------------------------------
def weighted_mha_forward(
    params, x, edge_index, edge_index_fake,
    edge_attr=None, edge_attr_fake=None,
    edge_logprob=None, edge_logprob_fake=None,
    node_logprob=None, node_prob=None,
    *, num_heads, out_dim, gamma, clamp, edge_tile=1024,
):
    # TODO(synk): full_graph=False, attack_mode and learnable-gamma (traced tensor)
    # variants of the reference module are not implemented.
    if clamp is None:
        # TODO(synk): clamp=None (unbounded scores) would need a segment-max pass.
        raise NotImplementedError("clamp=None path is not implemented")
    clamp = abs(float(clamp))

    n = x.shape[0]
    hd = num_heads * out_dim

    # Fused projections, laid out [Q | Qf | K | V | Kf] so the per-branch (K,V)/(V,Kf)
    # gather operands are contiguous column slices of the bf16 result (no concat copy).
    w_cat = jnp.concatenate(
        [params["Wq"], params["Wqf"], params["Wk"], params["Wv"], params["Wkf"]], axis=1)
    b_cat = jnp.concatenate(
        [params["bq"], params["bqf"], params["bk"], params["bv"], params["bkf"]], axis=0)
    proj = fused_linear(x, w_cat, b_cat)                   # [N, 5*HD] bf16

    q_real = proj[:, 0:hd]
    q_fake = proj[:, hd:2 * hd]
    kv_real = proj[:, 2 * hd:4 * hd]                       # [K  | V ]
    kv_fake = proj[:, 3 * hd:5 * hd]                       # [V  | Kf]

    # Replicated block-diagonal head matrix: one bf16 matmul both pools the per-head
    # score (sum over D) and broadcasts it to both 2*HD output halves.
    bd = jnp.kron(jnp.eye(num_heads, dtype=jnp.float32),
                  jnp.ones((out_dim, out_dim), jnp.float32))          # [HD, HD]
    bd2 = jnp.concatenate([bd, bd], axis=1).astype(jnp.bfloat16)      # [HD, 2*HD]

    def edge_proj_inputs(ea, e_count, wkey, bkey):
        if ea is not None:
            return (ea.astype(jnp.bfloat16),
                    params[wkey].astype(jnp.bfloat16),
                    params[bkey].reshape(1, hd).astype(jnp.float32))
        # No edge attributes: E == 1 everywhere, realised in-kernel as 0 @ 0 + 1.
        return (jnp.zeros((e_count, 1), jnp.bfloat16),
                jnp.zeros((1, hd), jnp.bfloat16),
                jnp.ones((1, hd), jnp.float32))

    def make_bias(src_idx, e_lp):
        b = jnp.zeros((src_idx.shape[0],), jnp.float32)
        if e_lp is not None:
            b = b + e_lp
        if node_logprob is not None:
            b = b + node_logprob[src_idx]
        elif node_prob is not None:
            lp = jnp.where(node_prob > 1e-30, jnp.log(node_prob), -jnp.inf)
            b = b + lp[src_idx]
        return jnp.maximum(b, _BIAS_MIN)[:, None]          # clamp; also removes -inf

    src, dst = edge_index[0], edge_index[1]
    srcf, dstf = edge_index_fake[0], edge_index_fake[1]

    ea_r, we_r, be_r = edge_proj_inputs(edge_attr, int(src.shape[0]), "We", "be")
    ea_f, we_f, be_f = edge_proj_inputs(edge_attr_fake, int(srcf.shape[0]), "Wef", "bef")
    bias_r = make_bias(src, edge_logprob)
    bias_f = make_bias(srcf, edge_logprob_fake)

    g = float(gamma)
    inv_d_sqrt = 1.0 / float(np.sqrt(out_dim))

    # TODO(synk): on v7x (2 TensorCores) the two branches could be merged into one
    # pallas_call with a leading size-2 "parallel" grid axis; kept as two launches here.
    wv = _attention_branch(
        kv_real, q_real, ea_r, we_r, be_r, src, dst, bias_r, bd2,
        hd=hd, inv_d_sqrt=inv_d_sqrt, clamp=clamp,
        scale=1.0 / (g + 1.0), v_first=False, edge_tile=edge_tile)
    wv = wv + _attention_branch(
        kv_fake, q_fake, ea_f, we_f, be_f, srcf, dstf, bias_f, bd2,
        hd=hd, inv_d_sqrt=inv_d_sqrt, clamp=clamp,
        scale=g / (g + 1.0), v_first=True, edge_tile=edge_tile)
    return wv.reshape(n, num_heads, out_dim)


# ----------------------------------------------------------------------------------
# Pure-JAX reference (mirrors the PyTorch module) for correctness checking.
# ----------------------------------------------------------------------------------
def reference_forward(
    params, x, edge_index, edge_index_fake, edge_attr, edge_attr_fake,
    edge_logprob, edge_logprob_fake, node_logprob,
    *, num_heads, out_dim, gamma, clamp,
):
    n = x.shape[0]
    h, d = num_heads, out_dim
    hp = jax.lax.Precision.HIGHEST

    def lin(a, w, b):
        return jnp.dot(a, w, precision=hp) + b

    q = lin(x, params["Wq"], params["bq"]).reshape(n, h, d)
    k = lin(x, params["Wk"], params["bk"]).reshape(n, h, d)
    v = lin(x, params["Wv"], params["bv"]).reshape(n, h, d)
    qf = lin(x, params["Wqf"], params["bqf"]).reshape(n, h, d)
    kf = lin(x, params["Wkf"], params["bkf"]).reshape(n, h, d)
    e = lin(edge_attr, params["We"], params["be"]).reshape(-1, h, d)
    ef = lin(edge_attr_fake, params["Wef"], params["bef"]).reshape(-1, h, d)

    def seg_softmax(score, index):
        m = jax.ops.segment_max(score, index, num_segments=n)
        ex = jnp.exp(score - m[index])
        s = jax.ops.segment_sum(ex, index, num_segments=n)
        return ex / s[index]

    def branch(kk, qq, ee, eidx, e_lp):
        srci, dsti = eidx[0], eidx[1]
        score = (kk[srci] * qq[dsti] * ee).sum(-1, keepdims=True) / np.sqrt(d)
        if clamp is not None:
            score = jnp.clip(score, -clamp, clamp)
        if e_lp is not None:
            score = score + e_lp.reshape(-1, 1, 1)
        if node_logprob is not None:
            score = score + node_logprob[srci].reshape(-1, 1, 1)
        return seg_softmax(score, dsti)

    s_real = branch(k, q, e, edge_index, edge_logprob)
    s_fake = branch(kf, qf, ef, edge_index_fake, edge_logprob_fake)
    s_real = s_real / (gamma + 1.0)
    s_fake = gamma * s_fake / (gamma + 1.0)

    wv = jax.ops.segment_sum(v[edge_index[0]] * s_real, edge_index[1], num_segments=n)
    wv = wv + jax.ops.segment_sum(
        v[edge_index_fake[0]] * s_fake, edge_index_fake[1], num_segments=n)
    return wv


# ----------------------------------------------------------------------------------
if __name__ == "__main__":
    in_dim = 32
    out_dim = 8
    num_heads = 4
    n_nodes = 16
    n_edges = 48
    n_edges_fake = 32
    gamma = 0.3
    clamp = 5.0

    key = jax.random.PRNGKey(0)
    keys = jax.random.split(key, 20)

    def init_linear(k_, fan_in, fan_out):
        kw, kb = jax.random.split(k_)
        bound = 1.0 / np.sqrt(fan_in)
        w = jax.random.uniform(kw, (fan_in, fan_out), jnp.float32, -bound, bound)
        b = jax.random.uniform(kb, (fan_out,), jnp.float32, -bound, bound)
        return w, b

    hd = out_dim * num_heads
    params = {}
    for i, name in enumerate(["q", "k", "e", "qf", "kf", "ef", "v"]):
        w, b = init_linear(keys[i], in_dim, hd)
        params[f"W{name}"] = w
        params[f"b{name}"] = b

    x = jax.random.normal(keys[7], (n_nodes, in_dim), jnp.float32)
    edge_attr = jax.random.normal(keys[8], (n_edges, in_dim), jnp.float32)
    edge_attr_fake = jax.random.normal(keys[9], (n_edges_fake, in_dim), jnp.float32)
    edge_index = jax.random.randint(keys[10], (2, n_edges), 0, n_nodes, jnp.int32)
    edge_index_fake = jax.random.randint(
        keys[11], (2, n_edges_fake), 0, n_nodes, jnp.int32)
    edge_logprob = jnp.log(
        jax.random.uniform(keys[12], (n_edges,), jnp.float32, 0.1, 1.0))
    edge_logprob_fake = jnp.log(
        jax.random.uniform(keys[13], (n_edges_fake,), jnp.float32, 0.1, 1.0))
    node_logprob = jnp.log(
        jax.random.uniform(keys[14], (n_nodes,), jnp.float32, 0.1, 1.0))

    out = weighted_mha_forward(
        params, x, edge_index, edge_index_fake,
        edge_attr=edge_attr, edge_attr_fake=edge_attr_fake,
        edge_logprob=edge_logprob, edge_logprob_fake=edge_logprob_fake,
        node_logprob=node_logprob,
        num_heads=num_heads, out_dim=out_dim, gamma=gamma, clamp=clamp,
        edge_tile=16,   # small tile so the example exercises a multi-step edge grid
    )
    out = jax.block_until_ready(out)

    ref = reference_forward(
        params, x, edge_index, edge_index_fake, edge_attr, edge_attr_fake,
        edge_logprob, edge_logprob_fake, node_logprob,
        num_heads=num_heads, out_dim=out_dim, gamma=gamma, clamp=clamp,
    )
    ref = jax.block_until_ready(ref)

    np.testing.assert_allclose(np.asarray(out), np.asarray(ref), rtol=2e-2, atol=2e-2)
    print("KERNEL_OK")
</pallas_src>

<mosaic_0001>
module attributes {stable_mosaic.version = 11 : i64} {
  func.func @_linear_kernel(%arg0: i32, %arg1: memref<16x32xbf16, #tpu.memory_space<vmem>>, %arg2: memref<32x160xbf16, #tpu.memory_space<vmem>>, %arg3: memref<1x160xf32, #tpu.memory_space<vmem>>, %arg4: memref<16x160xbf16, #tpu.memory_space<vmem>>) attributes {dimension_semantics = [#tpu.dimension_semantics<parallel>], iteration_bounds = array<i64: 1>, scalar_prefetch = 0 : i64, scratch_operands = 0 : i64, tpu.core_type = #tpu.core_type<tc>, window_params = [{transform_indices = @transform_0, window_bounds = array<i64: 16, 32>}, {pipeline_mode = #tpu.pipeline_mode<synchronous>, transform_indices = @transform_1, window_bounds = array<i64: 32, 160>}, {pipeline_mode = #tpu.pipeline_mode<synchronous>, transform_indices = @transform_2, window_bounds = array<i64: 1, 160>}, {transform_indices = @transform_3, window_bounds = array<i64: 16, 160>}]} {
    %c0 = arith.constant 0 : index
    %c0_0 = arith.constant 0 : index
    %0 = vector.load %arg1[%c0, %c0_0] : memref<16x32xbf16, #tpu.memory_space<vmem>>, vector<16x32xbf16>
    %c0_1 = arith.constant 0 : index
    %c0_2 = arith.constant 0 : index
    %1 = vector.load %arg2[%c0_1, %c0_2] : memref<32x160xbf16, #tpu.memory_space<vmem>>, vector<32x160xbf16>
    %cst = arith.constant dense<0.000000e+00> : vector<16x160xf32>
    %2 = tpu.matmul %0, %1, %cst {dimension_numbers = #tpu.dot_dimension_numbers<[1], [0], [0], [1], [0, 0, 1, 1], [], []>} : vector<16x32xbf16>, vector<32x160xbf16>, vector<16x160xf32> -> vector<16x160xf32>
    %c0_3 = arith.constant 0 : index
    %c0_4 = arith.constant 0 : index
    %3 = vector.load %arg3[%c0_3, %c0_4] : memref<1x160xf32, #tpu.memory_space<vmem>>, vector<1x160xf32>
    %4 = vector.broadcast %3 : vector<1x160xf32> to vector<16x160xf32>
    %5 = arith.addf %2, %4 : vector<16x160xf32>
    %6 = arith.truncf %5 : vector<16x160xf32> to vector<16x160xbf16>
    %c0_5 = arith.constant 0 : index
    %c0_6 = arith.constant 0 : index
    %7 = vector.load %arg4[%c0_5, %c0_6] : memref<16x160xbf16, #tpu.memory_space<vmem>>, vector<16x160xbf16>
    tpu.vector_store %arg4[%c0_5, %c0_6], %6 {strides = array<i32>} : memref<16x160xbf16, #tpu.memory_space<vmem>>, vector<16x160xbf16>,
    return
  }
  func.func @transform_0(%arg0: i32) -> (i32, i32) {
    %c0_i32 = arith.constant 0 : i32
    %c0_i32_0 = arith.constant 0 : i32
    return %arg0, %c0_i32 : i32, i32
  }
  func.func @transform_1(%arg0: i32) -> (i32, i32) {
    %c0_i32 = arith.constant 0 : i32
    %c0_i32_0 = arith.constant 0 : i32
    %c0_i32_1 = arith.constant 0 : i32
    return %c0_i32, %c0_i32_0 : i32, i32
  }
  func.func @transform_2(%arg0: i32) -> (i32, i32) {
    %c0_i32 = arith.constant 0 : i32
    %c0_i32_0 = arith.constant 0 : i32
    %c0_i32_1 = arith.constant 0 : i32
    return %c0_i32, %c0_i32_0 : i32, i32
  }
  func.func @transform_3(%arg0: i32) -> (i32, i32) {
    %c0_i32 = arith.constant 0 : i32
    %c0_i32_0 = arith.constant 0 : i32
    return %arg0, %c0_i32 : i32, i32
  }
}

</mosaic_0001>

<bundles_post_ra>
// kernel: tpu_custom_call.1
= control target key start
LH: loop header
LB: loop body
LE: loop exit
PB: predicated region body
PF: predicated region fallthrough
CT: control target
= control target key end

     0   :  { %8 = vsyncpa [#allocation3], 0  ;;  %s306_s0 = inlined_call_operand.hbm [shape: bf16[16,32], index: 0, kind: input, shape index: {}]   ;;  %s307_s1 = inlined_call_operand.hbm [shape: bf16[32,160], index: 1, kind: input, shape index: {}]   ;;  %s308_s2 = inlined_call_operand.vmem [shape: f32[1,160], index: 2, kind: input, shape index: {}]   ;;  %s309_s3 = inlined_call_operand.hbm [shape: bf16[16,160], index: 3, kind: output, shape index: {}]  }
   0x1   :  { %9 = vsyncpa [#allocation6], 0 }
   0x2   :  { %10 = vsyncpa [#allocation4], 0  ;;  %s260_s12 = smov [#allocation2]  }
   0x3   :  { %s16_s13 = sshll.u32 %s260_s12, 4  ;;  %s17_s13 = int_to_ptr.vmem [resolvable:$true] %s16_s13 }
   0x4   :  { %s202_s14 = scalar_lea.vmem %s17_s13, 128  ;;  %p207_p1 = scmp.lt.s32.totalorder %s17_s13, %s17_s13 }
   0x5   :  { %p203_p0 = scmp.ne.s32.totalorder %s17_s13, %s202_s14  ;;  %p208_p2 = scmp.lt.s32.totalorder %s202_s14, %s202_s14 }
   0x7   :  { %p209_p3 = por %p208_p2, %p207_p1 }
   0x9   :  { %p210_p4 = pnand %p209_p3, %p203_p0 }
   0xb   :  { %213 = shalt.err (!%p210_p4)
}
   0xc   :  { %s261_s15 = smov 64   ;;  %s262_s16 = smov 4  }
   0xd   :  { %22 = dma.hbm_to_vmem [thread:$0]  %s306_s0, 128, %s17_s13, [#allocation3], %s261_s15, %s261_s15, %s262_s16  }
   0xe   :  { %s263_s19 = smov [#allocation5]  }
   0xf   :  { %s28_s20 = sshll.u32 %s263_s19, 4  ;;  %s29_s20 = int_to_ptr.vmem [resolvable:$true] %s28_s20 }
  0x10   :  { %s222_s21 = scalar_lea.vmem %s29_s20, 512  ;;  %p227_p6 = scmp.lt.s32.totalorder %s29_s20, %s29_s20 }
  0x11   :  { %p223_p5 = scmp.ne.s32.totalorder %s29_s20, %s222_s21  ;;  %p228_p7 = scmp.lt.s32.totalorder %s222_s21, %s222_s21 }
  0x13   :  { %p229_p8 = por %p228_p7, %p227_p6 }
  0x15   :  { %p230_p9 = pnand %p229_p8, %p223_p5 }
  0x17   :  { %233 = shalt.err (!%p230_p9)
}
  0x18   :  { %s264_s22 = smov 128   ;;  %s265_s23 = smov 8  }
  0x19   :  { %34 = dma.hbm_to_vmem [thread:$0]  %s307_s1, 512, %s29_s20, [#allocation6], %s264_s22, %s264_s22, %s265_s23  }
  0x1a   :  { %254 = dma.done.wait [#allocation3], 128  }
  0x1b   :  { %255 = vsyncadd [#allocation3], 4294967168 }
  0x1c   :  { %256 = dma.done.wait [#allocation6], 512  }
  0x1d   :  { %257 = vsyncadd [#allocation6], 4294966784  ;;  %v266_v0 = vmov 0   ;;  %v187_v1 = vld [vmem:[#allocation5 + $0x14] ss:$8 sps:$4 sm:$0xff]   ;;  %vm87_vm0 = vcmask 261120   ;;  %v52_v6 = vlaneseq }
  0x1e   :  { %123 = vmatprep.mubr.bf16.mxu0 %v266_v0  ;;  %v189_v2 = vld [vmem:[#allocation5 + $0x10] ss:$8 sps:$4 sm:$0xff]   ;;  %103 = vmatprep.subr.bf16.mxu0 %v187_v1  ;;  %v190_v3 = vld [vmem:[#allocation5 + $0x4] ss:$8 sps:$4 sm:$0xff]   ;;  %v192_v4 = vld [vmem:[#allocation5] ss:$8 sps:$4 sm:$0xff]  }
  0x1f   :  { %104 = vmatpush1.bf16.msra.mxu0 %v189_v2  ;;  %v193_v5 = vld [vmem:[#allocation2] sm:$0xff]   ;;  %v53_v7 = vshrl.u32 %v52_v6, 7  ;;  %vm146_vm1 = vcmask 1043456   ;;  %vm147_vm2 = vcmask 261124   ;;  %s267_s26 = smov [#allocation7]  }
  0x20   :  { %105 = vmatprep.subr.bf16.mxu0 %v190_v3  ;;  %v50_v10 = vld [vmem:[%s308_s2] sm:$0x3]  ;;  %vm148_vm3 = vmor %vm147_vm2, %vm146_vm1  ;;  %s156_s27 = sshll.u32 %s267_s26, 4  ;;  %s157_s27 = int_to_ptr.vmem [resolvable:$true] %s156_s27 }
  0x21   :  { %v54_v8 = vsub.s32 0, %v53_v7  ;;  %v58_v9 = vsub.s32 1, %v53_v7  ;;  %s234_s2 = scalar_lea.vmem %s157_s27, 256  ;;  %p239_p11 = scmp.lt.s32.totalorder %s157_s27, %s157_s27 }
  0x22   :  { %p235_p10 = scmp.ne.s32.totalorder %s157_s27, %s234_s2  ;;  %p240_p12 = scmp.lt.s32.totalorder %s234_s2, %s234_s2 }
  0x23   :  { %106 = vmatpush1.bf16.msra.mxu0 %v192_v4  ;;  %v55_v11 = vrot.slane %v50_v10, %v54_v8  ;;  %v59_v12 = vrot.slane %v50_v10, %v58_v9 }
  0x24   :  { %p241_p13 = por %p240_p12, %p239_p11 }
  0x26   :  { %174 = vmatmul.mubr.msk.bf16.vlgmr.msra.gmra.mxu0 %vm87_vm0, %v193_v5  ;;  %p242_p0 = pnand %p241_p13, %p235_p10 }
  0xe6   :  { %v125_v13 = vpop.f32.mrf.mxu0 }
  0xe7   :  { %v126_v15 = vadd.f32 %v125_v13, %v55_v11 }
  0xe8   :  { %v127_v14 = vpop.f32.mrf.mxu0 }
  0xe9   :  { %v128_v16 = vadd.f32 %v127_v14, %v59_v12 }
  0xea   :  { %v129_v17 = vpop.f32.mrf.mxu0 }
  0xeb   :  { %v177_v18 = vpack.c.bf16 %v128_v16, %v126_v15  ;;  %v130_v20 = vadd.f32 %v129_v17, %v55_v11 }
  0xec   :  { %v131_v19 = vpop.f32.mrf.mxu0 }
  0xed   :  { %v132_v21 = vadd.f32 %v131_v19, %v59_v12  ;;  %149 = vst.msk [vmem:[#allocation7] sm:$0xff] %vm148_vm3, %v177_v18 }
  0xef   :  { %v178_v22 = vpack.c.bf16 %v132_v21, %v130_v20 }
  0xf1   :  { %150 = vst.msk [vmem:[#allocation7 + $0x8] sm:$0xff] %vm148_vm3, %v178_v22 }
  0xf2   :  { %245 = shalt.err (!%p242_p0)
}
  0xf3   :  { %162 = dma.vmem_to_hbm [thread:$0]  %s157_s27, 256, %s309_s3, [#allocation4], %s264_s22, %s264_s22, %s265_s23  }
  0xf4   :  { %258 = dma.done.wait [#allocation4], 256  }
  0xf5   :  { %259 = vsyncadd [#allocation4], 4294967040 }
  0xf6   :  { %166 = vsyncpa [#allocation3], 1 }
  0xf7   :  { %167 = vsyncpa [#allocation6], 1 }
  0xf8   :  { %168 = vsyncpa [#allocation4], 1 }

</bundles_post_ra>
